<compile_context>
chip_gen: v6e
topology: v6e:2x2x1
jax: 0.10.0
libtpu: 0.0.40
codegen_flags: <defaults>
</compile_context>

<pallas_src>
import functools

import jax
import jax.numpy as jnp
from jax import lax
from jax.experimental import pallas as pl
from jax.experimental.pallas import tpu as pltpu


def _round_up(x, m):
    return (x + m - 1) // m * m


def _basket_embed_kernel(ids_ref, emb_ref, out_ref, *, pool_type, tk):
    """One (row-block, vocab-tile) grid step.

    ids_ref : (TR, max_items) int32   flattened (batch*max_len) rows, -1 = pad
    emb_ref : (tk, H_pad)     float32 current vocab tile of the embedding table
    out_ref : (TR, H_pad)     float32 resident across the K axis (accumulator)
    """
    k = pl.program_id(1)
    num_k = pl.num_programs(1)

    ids = ids_ref[...]                                   # (TR, max_items)
    tr, max_items = ids.shape
    valid = ids >= 0
    local = ids - k * tk                                 # id relative to this tile
    active = jnp.logical_and(valid,
                             jnp.logical_and(local >= 0, local < tk))

    lane_iota = lax.broadcasted_iota(jnp.int32, (tr, tk), 1)
    neg_big = jnp.float32(-3.0e38)

    if pool_type in ("sum", "mean"):
        @pl.when(k == 0)
        def _():
            out_ref[...] = jnp.zeros(out_ref.shape, out_ref.dtype)

        # Accumulate 2-D one-hot slices into counts; never materialize the
        # (TR, max_items, vocab) 3-D one-hot.  max_items is small & static.
        counts = jnp.zeros((tr, tk), jnp.float32)
        for j in range(max_items):
            hit = jnp.logical_and(lane_iota == local[:, j:j + 1],
                                  active[:, j:j + 1])
            counts = counts + jnp.where(hit, 1.0, 0.0)

        out_ref[...] += jnp.dot(counts, emb_ref[...],
                                preferred_element_type=jnp.float32)

        if pool_type == "mean":
            @pl.when(k == num_k - 1)
            def _():
                blen = jnp.sum(valid.astype(jnp.float32), axis=1, keepdims=True)
                # Normalize AFTER the matmul: a (TR, H) scale instead of a
                # (TR, vocab) scale.  approx=False keeps the f32 reference
                # tolerance; the reciprocal is over (TR, 1) so it is cheap.
                out_ref[...] *= pl.reciprocal(jnp.maximum(blen, 1.0),
                                              approx=False)

    elif pool_type == "max":
        @pl.when(k == 0)
        def _():
            out_ref[...] = jnp.full(out_ref.shape, neg_big, out_ref.dtype)

        # Running max over items; each item's embedding row lives in exactly
        # one vocab tile, so the cross-tile running max in out_ref is exact.
        m = out_ref[...]
        for j in range(max_items):
            act = active[:, j:j + 1]                      # (TR, 1)
            hit = jnp.logical_and(lane_iota == local[:, j:j + 1], act)
            oh = jnp.where(hit, 1.0, 0.0)                 # (TR, tk)
            g = jnp.dot(oh, emb_ref[...],
                        preferred_element_type=jnp.float32)  # (TR, H_pad)
            m = jnp.maximum(m, jnp.where(act, g, neg_big))
        out_ref[...] = m

        @pl.when(k == num_k - 1)
        def _():
            blen = jnp.sum(valid.astype(jnp.float32), axis=1, keepdims=True)
            out_ref[...] = jnp.where(blen > 0, out_ref[...], 0.0)
    else:
        raise ValueError(f"unknown pool type {pool_type}")


def basket_embedding(item_ids, emb_table, pool_type="mean", *,
                     row_tile=256, k_tile=512):
    """item_ids: int32 [B, max_len, max_items] (-1 = pad); emb_table: f32 [item_num, hidden]."""
    if pool_type not in ("mean", "sum", "max"):
        raise ValueError(f"unknown pool type {pool_type}")

    B, max_len, max_items = item_ids.shape
    item_num, hidden = emb_table.shape

    # Flatten (batch, max_len) into rows and pad to a TPU-friendly row tile
    # so the MXU M dimension is large and per-grid-step overhead is amortized.
    rows = B * max_len
    tr = min(row_tile, _round_up(rows, 8))
    rows_pad = _round_up(rows, tr)

    # Lane-dense output / matmul N: pad hidden to a multiple of 128.
    h_pad = _round_up(hidden, 128)

    # K-tile the vocabulary so the table streams tile-by-tile through VMEM.
    tk = min(k_tile, _round_up(item_num, 8))
    items_pad = _round_up(item_num, tk)

    ids2d = item_ids.reshape(rows, max_items)
    ids2d = jnp.pad(ids2d, ((0, rows_pad - rows), (0, 0)), constant_values=-1)
    emb_pad = jnp.pad(emb_table,
                      ((0, items_pad - item_num), (0, h_pad - hidden)))

    num_r = rows_pad // tr
    num_k = items_pad // tk

    kernel = functools.partial(_basket_embed_kernel,
                               pool_type=pool_type, tk=tk)

    out = pl.pallas_call(
        kernel,
        out_shape=jax.ShapeDtypeStruct((rows_pad, h_pad), jnp.float32),
        grid_spec=pltpu.PrefetchScalarGridSpec(
            num_scalar_prefetch=0,
            grid=(num_r, num_k),
            in_specs=[
                pl.BlockSpec((tr, max_items), lambda r, k: (r, 0)),
                pl.BlockSpec((tk, h_pad), lambda r, k: (k, 0)),
            ],
            out_specs=pl.BlockSpec((tr, h_pad), lambda r, k: (r, 0)),
        ),
        compiler_params=pltpu.CompilerParams(
            dimension_semantics=("parallel", "arbitrary")),
    )(ids2d, emb_pad)

    return out[:rows, :hidden].reshape(B, max_len, hidden)


def _reference(item_ids, emb_table, pool_type):
    """Pure-JAX reference matching the PyTorch forward."""
    ids = jnp.maximum(item_ids, 0)
    valid = (item_ids >= 0).astype(jnp.float32)                 # [B, L, I]
    gathered = emb_table[ids] * valid[..., None]                # [B, L, I, H]
    lens = jnp.sum(valid, axis=-1, keepdims=True)               # [B, L, 1]
    if pool_type == "sum":
        return jnp.sum(gathered, axis=2)
    if pool_type == "mean":
        return jnp.sum(gathered, axis=2) / jnp.maximum(lens, 1.0)
    if pool_type == "max":
        neg = jnp.float32(-3.0e38)
        m = jnp.max(jnp.where((item_ids >= 0)[..., None], emb_table[ids], neg),
                    axis=2)
        return jnp.where(lens > 0, m, 0.0)
    raise ValueError(pool_type)
    # TODO(synk): the torch module accepts arbitrary ragged python lists; here
    # ragged baskets are densified to [B, max_len, max_items] with -1 padding.


if __name__ == "__main__":
    # Small, module-consistent shapes.
    B = 2          # batch of basket sequences
    MAX_LEN = 8    # max_len (baskets per sequence, zero-padded)
    MAX_ITEMS = 8  # max items per basket (ragged, -1 padded)
    ITEM_NUM = 128 # vocabulary size
    HIDDEN = 32    # hidden_size

    key = jax.random.PRNGKey(0)
    k_emb, k_ids, k_blen, k_slen = jax.random.split(key, 4)

    # Deterministic embedding table (nn.Embedding default: N(0,1)).
    emb_table = jax.random.normal(k_emb, (ITEM_NUM, HIDDEN), dtype=jnp.float32)

    # Build ragged baskets deterministically, then densify with -1 padding.
    ids_full = jax.random.randint(k_ids, (B, MAX_LEN, MAX_ITEMS), 0, ITEM_NUM,
                                  dtype=jnp.int32)
    basket_lens = jax.random.randint(k_blen, (B, MAX_LEN), 1, MAX_ITEMS + 1,
                                     dtype=jnp.int32)
    seq_lens = jax.random.randint(k_slen, (B,), 3, MAX_LEN + 1, dtype=jnp.int32)

    item_pos = jnp.arange(MAX_ITEMS)[None, None, :]
    basket_pos = jnp.arange(MAX_LEN)[None, :]
    item_mask = item_pos < basket_lens[:, :, None]            # valid items
    basket_mask = basket_pos < seq_lens[:, None]              # real baskets
    mask = jnp.logical_and(item_mask, basket_mask[:, :, None])
    item_ids = jnp.where(mask, ids_full, -1).astype(jnp.int32)

    for pool in ("mean", "sum", "max"):
        out = basket_embedding(item_ids, emb_table, pool_type=pool)
        out = jax.block_until_ready(out)
        ref = _reference(item_ids, emb_table, pool)
        assert out.shape == (B, MAX_LEN, HIDDEN)
        assert jnp.allclose(out, ref, atol=1e-4, rtol=1e-4), f"mismatch ({pool})"

    print("KERNEL_OK")
</pallas_src>

<mosaic_0001>
module attributes {stable_mosaic.version = 11 : i64} {
  func.func @_basket_embed_kernel(%arg0: i32, %arg1: i32, %arg2: memref<16x8xi32, #tpu.memory_space<vmem>>, %arg3: memref<128x128xf32, #tpu.memory_space<vmem>>, %arg4: memref<16x128xf32, #tpu.memory_space<vmem>>) attributes {dimension_semantics = [#tpu.dimension_semantics<parallel>, #tpu.dimension_semantics<arbitrary>], iteration_bounds = array<i64: 1, 1>, scalar_prefetch = 0 : i64, scratch_operands = 0 : i64, tpu.core_type = #tpu.core_type<tc>, window_params = [{transform_indices = @transform_0, window_bounds = array<i64: 16, 8>}, {transform_indices = @transform_1, window_bounds = array<i64: 128, 128>}, {transform_indices = @transform_2, window_bounds = array<i64: 16, 128>}]} {
    %c0 = arith.constant 0 : index
    %c0_0 = arith.constant 0 : index
    %0 = vector.load %arg2[%c0, %c0_0] : memref<16x8xi32, #tpu.memory_space<vmem>>, vector<16x8xi32>
    %c0_i32 = arith.constant 0 : i32
    %1 = vector.broadcast %c0_i32 : i32 to vector<16x8xi32>
    %2 = arith.cmpi sge, %0, %1 : vector<16x8xi32>
    %c128_i32 = arith.constant 128 : i32
    %3 = arith.muli %arg1, %c128_i32 : i32
    %4 = vector.broadcast %3 : i32 to vector<16x8xi32>
    %5 = arith.subi %0, %4 : vector<16x8xi32>
    %c0_i32_1 = arith.constant 0 : i32
    %6 = vector.broadcast %c0_i32_1 : i32 to vector<16x8xi32>
    %7 = arith.cmpi sge, %5, %6 : vector<16x8xi32>
    %c128_i32_2 = arith.constant 128 : i32
    %8 = vector.broadcast %c128_i32_2 : i32 to vector<16x8xi32>
    %9 = arith.cmpi slt, %5, %8 : vector<16x8xi32>
    %10 = arith.andi %7, %9 : vector<16x8xi1>
    %11 = arith.andi %2, %10 : vector<16x8xi1>
    %12 = tpu.iota {dimensions = array<i32: 1>} : vector<16x128xi32>
    %c0_i32_3 = arith.constant 0 : i32
    %13 = arith.cmpi eq, %arg1, %c0_i32_3 : i32
    %14 = arith.extui %13 : i1 to i32
    %c0_i32_4 = arith.constant 0 : i32
    %15 = arith.cmpi ne, %14, %c0_i32_4 : i32
    scf.if %15 {
      %cst_30 = arith.constant 0.000000e+00 : f32
      %105 = vector.broadcast %cst_30 : f32 to vector<16x128xf32>
      %c0_31 = arith.constant 0 : index
      %c0_32 = arith.constant 0 : index
      %106 = vector.load %arg4[%c0_31, %c0_32] : memref<16x128xf32, #tpu.memory_space<vmem>>, vector<16x128xf32>
      tpu.vector_store %arg4[%c0_31, %c0_32], %105 {strides = array<i32>} : memref<16x128xf32, #tpu.memory_space<vmem>>, vector<16x128xf32>,
    } else {
    }
    %cst = arith.constant 0.000000e+00 : f32
    %16 = vector.broadcast %cst : f32 to vector<16x128xf32>
    %17 = vector.extract_strided_slice %5 {offsets = [0, 0], sizes = [16, 1], strides = [1, 1]} : vector<16x8xi32> to vector<16x1xi32>
    %18 = vector.broadcast %17 : vector<16x1xi32> to vector<16x128xi32>
    %19 = arith.cmpi eq, %12, %18 : vector<16x128xi32>
    %20 = vector.extract_strided_slice %11 {offsets = [0, 0], sizes = [16, 1], strides = [1, 1]} : vector<16x8xi1> to vector<16x1xi1>
    %21 = vector.broadcast %20 : vector<16x1xi1> to vector<16x128xi1>
    %22 = arith.andi %19, %21 : vector<16x128xi1>
    %cst_5 = arith.constant 1.000000e+00 : f32
    %cst_6 = arith.constant 0.000000e+00 : f32
    %23 = vector.broadcast %cst_5 : f32 to vector<16x128xf32>
    %24 = vector.broadcast %cst_6 : f32 to vector<16x128xf32>
    %25 = arith.select %22, %23, %24 : vector<16x128xi1>, vector<16x128xf32>
    %26 = arith.addf %16, %25 : vector<16x128xf32>
    %27 = vector.extract_strided_slice %5 {offsets = [0, 1], sizes = [16, 1], strides = [1, 1]} : vector<16x8xi32> to vector<16x1xi32>
    %28 = vector.broadcast %27 : vector<16x1xi32> to vector<16x128xi32>
    %29 = arith.cmpi eq, %12, %28 : vector<16x128xi32>
    %30 = vector.extract_strided_slice %11 {offsets = [0, 1], sizes = [16, 1], strides = [1, 1]} : vector<16x8xi1> to vector<16x1xi1>
    %31 = vector.broadcast %30 : vector<16x1xi1> to vector<16x128xi1>
    %32 = arith.andi %29, %31 : vector<16x128xi1>
    %cst_7 = arith.constant 1.000000e+00 : f32
    %cst_8 = arith.constant 0.000000e+00 : f32
    %33 = vector.broadcast %cst_7 : f32 to vector<16x128xf32>
    %34 = vector.broadcast %cst_8 : f32 to vector<16x128xf32>
    %35 = arith.select %32, %33, %34 : vector<16x128xi1>, vector<16x128xf32>
    %36 = arith.addf %26, %35 : vector<16x128xf32>
    %37 = vector.extract_strided_slice %5 {offsets = [0, 2], sizes = [16, 1], strides = [1, 1]} : vector<16x8xi32> to vector<16x1xi32>
    %38 = vector.broadcast %37 : vector<16x1xi32> to vector<16x128xi32>
    %39 = arith.cmpi eq, %12, %38 : vector<16x128xi32>
    %40 = vector.extract_strided_slice %11 {offsets = [0, 2], sizes = [16, 1], strides = [1, 1]} : vector<16x8xi1> to vector<16x1xi1>
    %41 = vector.broadcast %40 : vector<16x1xi1> to vector<16x128xi1>
    %42 = arith.andi %39, %41 : vector<16x128xi1>
    %cst_9 = arith.constant 1.000000e+00 : f32
    %cst_10 = arith.constant 0.000000e+00 : f32
    %43 = vector.broadcast %cst_9 : f32 to vector<16x128xf32>
    %44 = vector.broadcast %cst_10 : f32 to vector<16x128xf32>
    %45 = arith.select %42, %43, %44 : vector<16x128xi1>, vector<16x128xf32>
    %46 = arith.addf %36, %45 : vector<16x128xf32>
    %47 = vector.extract_strided_slice %5 {offsets = [0, 3], sizes = [16, 1], strides = [1, 1]} : vector<16x8xi32> to vector<16x1xi32>
    %48 = vector.broadcast %47 : vector<16x1xi32> to vector<16x128xi32>
    %49 = arith.cmpi eq, %12, %48 : vector<16x128xi32>
    %50 = vector.extract_strided_slice %11 {offsets = [0, 3], sizes = [16, 1], strides = [1, 1]} : vector<16x8xi1> to vector<16x1xi1>
    %51 = vector.broadcast %50 : vector<16x1xi1> to vector<16x128xi1>
    %52 = arith.andi %49, %51 : vector<16x128xi1>
    %cst_11 = arith.constant 1.000000e+00 : f32
    %cst_12 = arith.constant 0.000000e+00 : f32
    %53 = vector.broadcast %cst_11 : f32 to vector<16x128xf32>
    %54 = vector.broadcast %cst_12 : f32 to vector<16x128xf32>
    %55 = arith.select %52, %53, %54 : vector<16x128xi1>, vector<16x128xf32>
    %56 = arith.addf %46, %55 : vector<16x128xf32>
    %57 = vector.extract_strided_slice %5 {offsets = [0, 4], sizes = [16, 1], strides = [1, 1]} : vector<16x8xi32> to vector<16x1xi32>
    %58 = vector.broadcast %57 : vector<16x1xi32> to vector<16x128xi32>
    %59 = arith.cmpi eq, %12, %58 : vector<16x128xi32>
    %60 = vector.extract_strided_slice %11 {offsets = [0, 4], sizes = [16, 1], strides = [1, 1]} : vector<16x8xi1> to vector<16x1xi1>
    %61 = vector.broadcast %60 : vector<16x1xi1> to vector<16x128xi1>
    %62 = arith.andi %59, %61 : vector<16x128xi1>
    %cst_13 = arith.constant 1.000000e+00 : f32
    %cst_14 = arith.constant 0.000000e+00 : f32
    %63 = vector.broadcast %cst_13 : f32 to vector<16x128xf32>
    %64 = vector.broadcast %cst_14 : f32 to vector<16x128xf32>
    %65 = arith.select %62, %63, %64 : vector<16x128xi1>, vector<16x128xf32>
    %66 = arith.addf %56, %65 : vector<16x128xf32>
    %67 = vector.extract_strided_slice %5 {offsets = [0, 5], sizes = [16, 1], strides = [1, 1]} : vector<16x8xi32> to vector<16x1xi32>
    %68 = vector.broadcast %67 : vector<16x1xi32> to vector<16x128xi32>
    %69 = arith.cmpi eq, %12, %68 : vector<16x128xi32>
    %70 = vector.extract_strided_slice %11 {offsets = [0, 5], sizes = [16, 1], strides = [1, 1]} : vector<16x8xi1> to vector<16x1xi1>
    %71 = vector.broadcast %70 : vector<16x1xi1> to vector<16x128xi1>
    %72 = arith.andi %69, %71 : vector<16x128xi1>
    %cst_15 = arith.constant 1.000000e+00 : f32
    %cst_16 = arith.constant 0.000000e+00 : f32
    %73 = vector.broadcast %cst_15 : f32 to vector<16x128xf32>
    %74 = vector.broadcast %cst_16 : f32 to vector<16x128xf32>
    %75 = arith.select %72, %73, %74 : vector<16x128xi1>, vector<16x128xf32>
    %76 = arith.addf %66, %75 : vector<16x128xf32>
    %77 = vector.extract_strided_slice %5 {offsets = [0, 6], sizes = [16, 1], strides = [1, 1]} : vector<16x8xi32> to vector<16x1xi32>
    %78 = vector.broadcast %77 : vector<16x1xi32> to vector<16x128xi32>
    %79 = arith.cmpi eq, %12, %78 : vector<16x128xi32>
    %80 = vector.extract_strided_slice %11 {offsets = [0, 6], sizes = [16, 1], strides = [1, 1]} : vector<16x8xi1> to vector<16x1xi1>
    %81 = vector.broadcast %80 : vector<16x1xi1> to vector<16x128xi1>
    %82 = arith.andi %79, %81 : vector<16x128xi1>
    %cst_17 = arith.constant 1.000000e+00 : f32
    %cst_18 = arith.constant 0.000000e+00 : f32
    %83 = vector.broadcast %cst_17 : f32 to vector<16x128xf32>
    %84 = vector.broadcast %cst_18 : f32 to vector<16x128xf32>
    %85 = arith.select %82, %83, %84 : vector<16x128xi1>, vector<16x128xf32>
    %86 = arith.addf %76, %85 : vector<16x128xf32>
    %87 = vector.extract_strided_slice %5 {offsets = [0, 7], sizes = [16, 1], strides = [1, 1]} : vector<16x8xi32> to vector<16x1xi32>
    %88 = vector.broadcast %87 : vector<16x1xi32> to vector<16x128xi32>
    %89 = arith.cmpi eq, %12, %88 : vector<16x128xi32>
    %90 = vector.extract_strided_slice %11 {offsets = [0, 7], sizes = [16, 1], strides = [1, 1]} : vector<16x8xi1> to vector<16x1xi1>
    %91 = vector.broadcast %90 : vector<16x1xi1> to vector<16x128xi1>
    %92 = arith.andi %89, %91 : vector<16x128xi1>
    %cst_19 = arith.constant 1.000000e+00 : f32
    %cst_20 = arith.constant 0.000000e+00 : f32
    %93 = vector.broadcast %cst_19 : f32 to vector<16x128xf32>
    %94 = vector.broadcast %cst_20 : f32 to vector<16x128xf32>
    %95 = arith.select %92, %93, %94 : vector<16x128xi1>, vector<16x128xf32>
    %96 = arith.addf %86, %95 : vector<16x128xf32>
    %c0_21 = arith.constant 0 : index
    %c0_22 = arith.constant 0 : index
    %97 = vector.load %arg4[%c0_21, %c0_22] : memref<16x128xf32, #tpu.memory_space<vmem>>, vector<16x128xf32>
    %c0_23 = arith.constant 0 : index
    %c0_24 = arith.constant 0 : index
    %98 = vector.load %arg3[%c0_23, %c0_24] : memref<128x128xf32, #tpu.memory_space<vmem>>, vector<128x128xf32>
    %cst_25 = arith.constant dense<0.000000e+00> : vector<16x128xf32>
    %99 = tpu.matmul %96, %98, %cst_25 {dimension_numbers = #tpu.dot_dimension_numbers<[1], [0], [0], [1], [0, 0, 1, 1], [], []>} : vector<16x128xf32>, vector<128x128xf32>, vector<16x128xf32> -> vector<16x128xf32>
    %100 = arith.addf %97, %99 : vector<16x128xf32>
    %c0_26 = arith.constant 0 : index
    %c0_27 = arith.constant 0 : index
    %101 = vector.load %arg4[%c0_26, %c0_27] : memref<16x128xf32, #tpu.memory_space<vmem>>, vector<16x128xf32>
    tpu.vector_store %arg4[%c0_26, %c0_27], %100 {strides = array<i32>} : memref<16x128xf32, #tpu.memory_space<vmem>>, vector<16x128xf32>,
    %c0_i32_28 = arith.constant 0 : i32
    %102 = arith.cmpi eq, %arg1, %c0_i32_28 : i32
    %103 = arith.extui %102 : i1 to i32
    %c0_i32_29 = arith.constant 0 : i32
    %104 = arith.cmpi ne, %103, %c0_i32_29 : i32
    scf.if %104 {
      %105 = arith.extui %2 : vector<16x8xi1> to vector<16x8xi32>
      %106 = arith.sitofp %105 : vector<16x8xi32> to vector<16x8xf32>
      %cst_30 = arith.constant dense<0.000000e+00> : vector<16xf32>
      %107 = vector.multi_reduction <add>, %106, %cst_30 [1] : vector<16x8xf32> to vector<16xf32>
      %108 = vector.shape_cast %107 : vector<16xf32> to vector<16x1xf32>
      %c0_31 = arith.constant 0 : index
      %c0_32 = arith.constant 0 : index
      %109 = vector.load %arg4[%c0_31, %c0_32] : memref<16x128xf32, #tpu.memory_space<vmem>>, vector<16x128xf32>
      %cst_33 = arith.constant 1.000000e+00 : f32
      %110 = vector.broadcast %cst_33 : f32 to vector<16x1xf32>
      %111 = arith.maximumf %108, %110 : vector<16x1xf32>
      %112 = tpu.reciprocal %111 : vector<16x1xf32> -> vector<16x1xf32>
      %113 = vector.broadcast %112 : vector<16x1xf32> to vector<16x128xf32>
      %114 = arith.mulf %109, %113 : vector<16x128xf32>
      %c0_34 = arith.constant 0 : index
      %c0_35 = arith.constant 0 : index
      %115 = vector.load %arg4[%c0_34, %c0_35] : memref<16x128xf32, #tpu.memory_space<vmem>>, vector<16x128xf32>
      tpu.vector_store %arg4[%c0_34, %c0_35], %114 {strides = array<i32>} : memref<16x128xf32, #tpu.memory_space<vmem>>, vector<16x128xf32>,
    } else {
    }
    return
  }
  func.func @transform_0(%arg0: i32, %arg1: i32) -> (i32, i32) {
    %c0_i32 = arith.constant 0 : i32
    %c0_i32_0 = arith.constant 0 : i32
    return %arg0, %c0_i32 : i32, i32
  }
  func.func @transform_1(%arg0: i32, %arg1: i32) -> (i32, i32) {
    %c0_i32 = arith.constant 0 : i32
    %c0_i32_0 = arith.constant 0 : i32
    return %arg1, %c0_i32 : i32, i32
  }
  func.func @transform_2(%arg0: i32, %arg1: i32) -> (i32, i32) {
    %c0_i32 = arith.constant 0 : i32
    %c0_i32_0 = arith.constant 0 : i32
    return %arg0, %c0_i32 : i32, i32
  }
}

</mosaic_0001>

<bundles_post_ra>
// kernel: tpu_custom_call.1
= control target key start
LH: loop header
LB: loop body
LE: loop exit
PB: predicated region body
PF: predicated region fallthrough
CT: control target
= control target key end

     0   :  { %7 = vsyncpa [#allocation3], 0  ;;  %s667_s0 = inlined_call_operand.vmem [shape: s32[16,8], index: 0, kind: input, shape index: {}]   ;;  %s668_s1 = inlined_call_operand.hbm [shape: f32[128,128], index: 1, kind: input, shape index: {}]   ;;  %s669_s2 = inlined_call_operand.hbm [shape: f32[16,128], index: 2, kind: output, shape index: {}]  }
   0x1   :  { %8 = vsyncpa [#allocation4], 0  ;;  %s499_s9 = smov [#allocation2]  }
   0x2   :  { %s16_s10 = sshll.u32 %s499_s9, 4  ;;  %s17_s10 = int_to_ptr.vmem [resolvable:$true] %s16_s10 }
   0x3   :  { %s463_s11 = scalar_lea.vmem %s17_s10, 2048  ;;  %p468_p1 = scmp.lt.s32.totalorder %s17_s10, %s17_s10 }
   0x4   :  { %p464_p0 = scmp.ne.s32.totalorder %s17_s10, %s463_s11  ;;  %p469_p2 = scmp.lt.s32.totalorder %s463_s11, %s463_s11 }
   0x6   :  { %p470_p3 = por %p469_p2, %p468_p1 }
   0x8   :  { %p471_p4 = pnand %p470_p3, %p464_p0 }
   0xa   :  { %474 = shalt.err (!%p471_p4)
}
   0xb   :  { %s500_s12 = smov 128   ;;  %s501_s13 = smov 8  }
   0xc   :  { %22 = dma.hbm_to_vmem [thread:$0]  %s668_s1, 2048, %s17_s10, [#allocation3], %s500_s12, %s500_s12, %s501_s13  }
   0xd   :  { %495 = dma.done.wait [#allocation3], 2048  }
   0xe   :  { %496 = vsyncadd [#allocation3], 4294965248  ;;  %v502_v0 = vmov 1   ;;  %v503_v1 = vmov 0   ;;  %v536_v2 = vld [vmem:[%s667_s0] sm:$0xff]  ;;  %v541_v3 = vld [vmem:[%s667_s0 + $0x8] sm:$0xff]  ;;  %v42_v53 = vlaneseq }
   0xf   :  { %435 = vset.pattern.permute.xlu1 %v502_v0  ;;  %434 = vset.pattern.permute.xlu0 %v503_v1  ;;  %vm28_vm0 = vcmp.ge.s32.totalorder %v536_v2, 0  ;;  %vm29_vm1 = vcmp.ge.s32.totalorder %v541_v3, 0  ;;  %vm36_vm2 = vcmp.lt.s32.totalorder %v536_v2, 128  ;;  %vm37_vm3 = vcmp.lt.s32.totalorder %v541_v3, 128  ;;  %v245_v11 = vld [vmem:[#allocation2 + $0x78] sm:$0xff]  ;;  %v244_v13 = vld [vmem:[#allocation2 + $0x70] sm:$0xff] }
  0x10   :  { %75 = vperm.xlu1 %435, %v536_v2   ;;  %51 = vperm.xlu0 %434, %v536_v2   ;;  %vm38_vm4 = vmand %vm28_vm0, %vm36_vm2  ;;  %v504_v6 = vmov 2   ;;  %v505_v7 = vmov 3   ;;  %v506_v8 = vmov 4   ;;  %v507_v9 = vmov 5   ;;  %v243_v14 = vld [vmem:[#allocation2 + $0x68] sm:$0xff]  ;;  %v242_v15 = vld [vmem:[#allocation2 + $0x60] sm:$0xff] }
  0x11   :  { %vm39_vm5 = vmand %vm29_vm1, %vm37_vm3  ;;  %v508_v10 = vmov 6   ;;  %v509_v12 = vmov 7   ;;  %386 = vmatprep.subr.mxu0 %v245_v11  ;;  %v241_v16 = vld [vmem:[#allocation2 + $0x58] sm:$0xff]  ;;  %v240_v17 = vld [vmem:[#allocation2 + $0x50] sm:$0xff]  ;;  %v510_v28 = vmov 0.0   ;;  %vm332_vm8 = vcmask 64512  }
  0x12   :  { %vm40_vm6 = vmand %vm28_vm0, %vm38_vm4  ;;  %387 = vmatpush3.msra.mxu0 %v245_v11  ;;  %v239_v18 = vld [vmem:[#allocation2 + $0x48] sm:$0xff]  ;;  %v238_v19 = vld [vmem:[#allocation2 + $0x40] sm:$0xff]  ;;  %v367_v29 = vsel %vm29_vm1, 1.0, %v510_v28  ;;  %v366_v31 = vsel %vm28_vm0, 1.0, %v510_v28  ;;  %v597_v56 = vand.u32 127, %v42_v53  ;;  %v670_v59 = vmov 0 }
  0x13   :  { %vm41_vm7 = vmand %vm29_vm1, %vm39_vm5  ;;  %v557_v4 = vsel %vm40_vm6, 1, %v503_v1  ;;  %388 = vmatprep.subr.mxu0 %v244_v13  ;;  %v237_v20 = vld [vmem:[#allocation2 + $0x38] sm:$0xff]  ;;  %v236_v21 = vld [vmem:[#allocation2 + $0x30] sm:$0xff]  ;;  %v336_v30 = vsel %vm332_vm8, %v367_v29, 0.0  ;;  %v333_v32 = vsel %vm332_vm8, %v366_v31, 0.0  ;;  %v672_v60 = vmov 0 }
  0x14   :  { %54 = vperm.xlu0 %434, %v541_v3   ;;  %83 = vperm.xlu1 %435, %v557_v4   ;;  %v561_v5 = vsel %vm41_vm7, 1, %v503_v1  ;;  %v235_v22 = vld [vmem:[#allocation2 + $0x28] sm:$0xff]  ;;  %v234_v23 = vld [vmem:[#allocation2 + $0x20] sm:$0xff]  ;;  %v233_v24 = vld [vmem:[#allocation2 + $0x18] sm:$0xff]  ;;  %s511_s0 = smov [#allocation5]  }
  0x15   :  { %389 = vmatpush3.msra.mxu0 %v244_v13  ;;  %v232_v25 = vld [vmem:[#allocation2 + $0x10] sm:$0xff]  ;;  %v231_v26 = vld [vmem:[#allocation2 + $0x8] sm:$0xff]  ;;  %v230_v27 = vld [vmem:[#allocation2] sm:$0xff]  ;;  %s354_s1 = sshll.u32 %s511_s0, 4  ;;  %s355_s1 = int_to_ptr.vmem [resolvable:$true] %s354_s1 }
  0x16   :  { %390 = vmatprep.subr.mxu0 %v243_v14  ;;  %s475_s20 = scalar_lea.vmem %s355_s1, 256  ;;  %p480_p6 = scmp.lt.s32.totalorder %s355_s1, %s355_s1 }
  0x17   :  { %391 = vmatpush3.msra.mxu0 %v243_v14  ;;  %p476_p5 = scmp.ne.s32.totalorder %s355_s1, %s475_s20  ;;  %p481_p7 = scmp.lt.s32.totalorder %s475_s20, %s475_s20 }
  0x18   :  { %61 = vperm.xlu0 %434, %v557_v4   ;;  %437 = vset.pattern.permute.xlu1 %v503_v1 }
  0x19   :  { %64 = vperm.xlu1 %437, %v561_v5   ;;  %392 = vmatprep.subr.mxu0 %v242_v15  ;;  %p482_p8 = por %p481_p7, %p480_p6 }
  0x1a   :  { %393 = vmatpush3.msra.mxu0 %v242_v15 }
  0x1b   :  { %394 = vmatprep.subr.mxu0 %v241_v16  ;;  %p483_p9 = pnand %p482_p8, %p476_p5 }
  0x1c   :  { %436 = vset.pattern.permute.xlu0 %v502_v0  ;;  %395 = vmatpush3.msra.mxu0 %v241_v16 }
  0x1d   :  { %78 = vperm.xlu0 %436, %v541_v3   ;;  %438 = vset.pattern.permute.xlu1 %v502_v0 }
  0x1e   :  { %86 = vperm.xlu1 %438, %v561_v5   ;;  %396 = vmatprep.subr.mxu0 %v240_v17 }
  0x1f   :  { %397 = vmatpush3.msra.mxu0 %v240_v17 }
  0x20   :  { %398 = vmatprep.subr.mxu0 %v239_v18 }
  0x21   :  { %440 = vset.pattern.permute.xlu0 %v504_v6  ;;  %399 = vmatpush3.msra.mxu0 %v239_v18 }
  0x22   :  { %105 = vperm.xlu0 %440, %v557_v4   ;;  %439 = vset.pattern.permute.xlu1 %v504_v6 }
  0x23   :  { %97 = vperm.xlu1 %439, %v536_v2   ;;  %400 = vmatprep.subr.mxu0 %v238_v19 }
  0x24   :  { %401 = vmatpush3.msra.mxu0 %v238_v19 }
  0x25   :  { %402 = vmatprep.subr.mxu0 %v237_v20 }
  0x26   :  { %441 = vset.pattern.permute.xlu0 %v505_v7  ;;  %403 = vmatpush3.msra.mxu0 %v237_v20 }
  0x27   :  { %119 = vperm.xlu0 %441, %v536_v2   ;;  %100 = vperm.xlu1 %439, %v541_v3  }
  0x28   :  { %404 = vmatprep.subr.mxu0 %v236_v21 }
  0x29   :  { %405 = vmatpush3.msra.mxu0 %v236_v21 }
  0x2a   :  { %406 = vmatprep.subr.mxu0 %v235_v22 }
  0x2b   :  { %130 = vperm.xlu0 %441, %v561_v5   ;;  %108 = vperm.xlu1 %439, %v561_v5  }
  0x2c   :  { %407 = vmatpush3.msra.mxu0 %v235_v22 }
  0x2d   :  { %408 = vmatprep.subr.mxu0 %v234_v23 }
  0x2e   :  { %409 = vmatpush3.msra.mxu0 %v234_v23 }
  0x2f   :  { %444 = vset.pattern.permute.xlu0 %v506_v8  ;;  %442 = vset.pattern.permute.xlu1 %v505_v7 }
  0x30   :  { %149 = vperm.xlu0 %444, %v557_v4   ;;  %127 = vperm.xlu1 %442, %v557_v4  }
  0x31   :  { %410 = vmatprep.subr.mxu0 %v233_v24 }
  0x32   :  { %411 = vmatpush3.msra.mxu0 %v233_v24 }
  0x33   :  { %412 = vmatprep.subr.mxu0 %v232_v25 }
  0x34   :  { %445 = vset.pattern.permute.xlu0 %v507_v9  ;;  %122 = vperm.xlu1 %442, %v541_v3  }
  0x35   :  { %163 = vperm.xlu0 %445, %v536_v2   ;;  %413 = vmatpush3.msra.mxu0 %v232_v25 }
  0x36   :  { %414 = vmatprep.subr.mxu0 %v231_v26 }
  0x37   :  { %415 = vmatpush3.msra.mxu0 %v231_v26 }
  0x38   :  { %443 = vset.pattern.permute.xlu1 %v506_v8  ;;  %416 = vmatprep.subr.mxu0 %v230_v27 }
  0x39   :  { %174 = vperm.xlu0 %445, %v561_v5   ;;  %141 = vperm.xlu1 %443, %v536_v2  }
  0x3a   :  { %417 = vmatpush3.msra.mxu0 %v230_v27 }
  0x3d   :  { %448 = vset.pattern.permute.xlu0 %v508_v10  ;;  %144 = vperm.xlu1 %443, %v541_v3  }
  0x3e   :  { %193 = vperm.xlu0 %448, %v557_v4  }
  0x41   :  { %152 = vperm.xlu1 %443, %v561_v5  }
  0x42   :  { %449 = vset.pattern.permute.xlu0 %v509_v12 }
  0x43   :  { %207 = vperm.xlu0 %449, %v536_v2  }
  0x45   :  { %446 = vset.pattern.permute.xlu1 %v507_v9 }
  0x46   :  { %171 = vperm.xlu1 %446, %v557_v4  }
  0x47   :  { %218 = vperm.xlu0 %449, %v561_v5  }
  0x4a   :  { %166 = vperm.xlu1 %446, %v541_v3  }
  0x4e   :  { %447 = vset.pattern.permute.xlu1 %v508_v10 }
  0x4f   :  { %185 = vperm.xlu1 %447, %v536_v2  }
  0x53   :  { %188 = vperm.xlu1 %447, %v541_v3  }
  0x57   :  { %196 = vperm.xlu1 %447, %v561_v5  }
  0x5b   :  { %450 = vset.pattern.permute.xlu1 %v509_v12 }
  0x5c   :  { %215 = vperm.xlu1 %450, %v557_v4  }
  0x60   :  { %210 = vperm.xlu1 %450, %v541_v3  }
  0x66   :  { %337 = vadd.xlane.f32.xlu0 %v336_v30 }
  0x84   :  { %334 = vadd.xlane.f32.xlu1 %v333_v32 }
  0x8b   :  { %v76_v33 = vpop.permute.xlu1 %75  ;;  %v52_v36 = vpop.permute.xlu0 %51 }
  0x8c   :  { %vm56_vm10 = vcmp.eq.s32.totalorder %v597_v56, %v52_v36  ;;  %vm80_vm12 = vcmp.eq.s32.totalorder %v597_v56, %v76_v33 }
  0x8f   :  { %v84_v34 = vpop.permute.xlu1 %83  ;;  %v55_v38 = vpop.permute.xlu0 %54 }
  0x90   :  { %vm88_vm9 = vcmp.eq.s32.totalorder %v84_v34, 1  ;;  %vm57_vm13 = vcmp.eq.s32.totalorder %v597_v56, %v55_v38 }
  0x91   :  { %vm602_vm15 = vmand %vm80_vm12, %vm88_vm9 }
  0x92   :  { %v671_v59 = vsel %vm602_vm15, 4294967295, %v670_v59 }
  0x93   :  { %v62_v41 = vpop.permute.xlu0 %61 }
  0x94   :  { %v65_v35 = vpop.permute.xlu1 %64  ;;  %vm66_vm11 = vcmp.eq.s32.totalorder %v62_v41, 1 }
  0x95   :  { %vm67_vm14 = vcmp.eq.s32.totalorder %v65_v35, 1  ;;  %vm68_vm2 = vmand %vm56_vm10, %vm66_vm11 }
  0x96   :  { %vm608_vm5 = vmand %vm57_vm13, %vm67_vm14  ;;  %v70_v62 = vsel %vm68_vm2, 1.0, %v510_v28 }
  0x97   :  { %v673_v60 = vsel %vm608_vm5, 4294967295, %v672_v60 }
  0x98   :  { %v79_v43 = vpop.permute.xlu0 %78 }
  0x99   :  { %v87_v37 = vpop.permute.xlu1 %86  ;;  %vm81_vm4 = vcmp.eq.s32.totalorder %v597_v56, %v79_v43 }
  0x9a   :  { %vm89_vm3 = vcmp.eq.s32.totalorder %v87_v37, 1 }
  0x9b   :  { %vm614_vm12 = vmand %vm81_vm4, %vm89_vm3 }
  0x9c   :  { %v93_v6 = vsel %vm614_vm12, 1.0, %v510_v28 }
  0x9d   :  { %v106_v45 = vpop.permute.xlu0 %105 }
  0x9e   :  { %v98_v39 = vpop.permute.xlu1 %97  ;;  %vm110_vm1 = vcmp.eq.s32.totalorder %v106_v45, 1 }
  0x9f   :  { %vm102_vm0 = vcmp.eq.s32.totalorder %v597_v56, %v98_v39 }
  0xa0   :  { %vm112_vm8 = vmand %vm102_vm0, %vm110_vm1  ;;  %vm676_vm0 = vnez %v671_v59 }
  0xa1   :  { %v92_v1 = vsel %vm676_vm0, 1.0, %v510_v28  ;;  %v114_v2 = vsel %vm112_vm8, 1.0, %v510_v28 }
  0xa2   :  { %v101_v40 = vpop.permute.xlu1 %100  ;;  %v120_v47 = vpop.permute.xlu0 %119  ;;  %v94_v5 = vadd.f32 %v92_v1, %v70_v62 }
  0xa3   :  { %vm124_vm7 = vcmp.eq.s32.totalorder %v597_v56, %v120_v47  ;;  %vm103_vm13 = vcmp.eq.s32.totalorder %v597_v56, %v101_v40 }
  0xa4   :  { %v116_v10 = vadd.f32 %v114_v2, %v94_v5 }
  0xa6   :  { %v109_v42 = vpop.permute.xlu1 %108  ;;  %v131_v49 = vpop.permute.xlu0 %130 }
  0xa7   :  { %vm111_vm9 = vcmp.eq.s32.totalorder %v109_v42, 1  ;;  %vm133_vm15 = vcmp.eq.s32.totalorder %v131_v49, 1 }
  0xa8   :  { %vm625_vm1 = vmand %vm103_vm13, %vm111_vm9  ;;  %vm681_vm13 = vnez %v673_v60 }
  0xa9   :  { %v71_v9 = vsel %vm681_vm13, 1.0, %v510_v28  ;;  %v115_v11 = vsel %vm625_vm1, 1.0, %v510_v28 }
  0xaa   :  { %v95_v14 = vadd.f32 %v93_v6, %v71_v9 }
  0xab   :  { %v128_v44 = vpop.permute.xlu1 %127  ;;  %v150_v52 = vpop.permute.xlu0 %149 }
  0xac   :  { %vm132_vm6 = vcmp.eq.s32.totalorder %v128_v44, 1  ;;  %vm154_vm11 = vcmp.eq.s32.totalorder %v150_v52, 1  ;;  %v117_v19 = vadd.f32 %v115_v11, %v95_v14 }
  0xad   :  { %vm134_vm14 = vmand %vm124_vm7, %vm132_vm6 }
  0xae   :  { %v136_v7 = vsel %vm134_vm14, 1.0, %v510_v28 }
  0xaf   :  { %v123_v46 = vpop.permute.xlu1 %122  ;;  %v138_v15 = vadd.f32 %v136_v7, %v116_v10 }
  0xb0   :  { %v164_v55 = vpop.permute.xlu0 %163  ;;  %vm125_vm5 = vcmp.eq.s32.totalorder %v597_v56, %v123_v46 }
  0xb1   :  { %vm168_vm3 = vcmp.eq.s32.totalorder %v597_v56, %v164_v55  ;;  %vm634_vm7 = vmand %vm125_vm5, %vm133_vm15 }
  0xb2   :  { %v137_v17 = vsel %vm634_vm7, 1.0, %v510_v28 }
  0xb3   :  { %v139_v23 = vadd.f32 %v137_v17, %v117_v19 }
  0xb4   :  { %v142_v48 = vpop.permute.xlu1 %141  ;;  %v175_v58 = vpop.permute.xlu0 %174 }
  0xb5   :  { %vm146_vm10 = vcmp.eq.s32.totalorder %v597_v56, %v142_v48  ;;  %vm177_vm12 = vcmp.eq.s32.totalorder %v175_v58, 1 }
  0xb6   :  { %vm156_vm4 = vmand %vm146_vm10, %vm154_vm11 }
  0xb7   :  { %v158_v12 = vsel %vm156_vm4, 1.0, %v510_v28 }
  0xb8   :  { %v145_v50 = vpop.permute.xlu1 %144  ;;  %v160_v20 = vadd.f32 %v158_v12, %v138_v15 }
  0xb9   :  { %v194_v0 = vpop.permute.xlu0 %193  ;;  %vm147_vm10 = vcmp.eq.s32.totalorder %v597_v56, %v145_v50 }
  0xba   :  { %vm198_vm9 = vcmp.eq.s32.totalorder %v194_v0, 1 }
  0xbc   :  { %v153_v51 = vpop.permute.xlu1 %152 }
  0xbd   :  { %vm155_vm6 = vcmp.eq.s32.totalorder %v153_v51, 1 }
  0xbe   :  { %vm157_vm15 = vmand %vm147_vm10, %vm155_vm6  ;;  %v208_v16 = vpop.permute.xlu0 %207 }
  0xbf   :  { %v159_v21 = vsel %vm157_vm15, 1.0, %v510_v28 }
  0xc0   :  { %v161_v27 = vadd.f32 %v159_v21, %v139_v23 }
  0xc1   :  { %v172_v54 = vpop.permute.xlu1 %171 }
  0xc2   :  { %vm176_vm2 = vcmp.eq.s32.totalorder %v172_v54, 1  ;;  %v219_v29 = vpop.permute.xlu0 %218 }
  0xc3   :  { %vm178_vm11 = vmand %vm168_vm3, %vm176_vm2  ;;  %vm212_vm3 = vcmp.eq.s32.totalorder %v597_v56, %v208_v16 }
  0xc4   :  { %v180_v18 = vsel %vm178_vm11, 1.0, %v510_v28 }
  0xc5   :  { %v167_v57 = vpop.permute.xlu1 %166  ;;  %v182_v24 = vadd.f32 %v180_v18, %v160_v20 }
  0xc6   :  { %vm169_vm5 = vcmp.eq.s32.totalorder %v597_v56, %v167_v57 }
  0xc7   :  { %vm179_vm1 = vmand %vm169_vm5, %vm177_vm12 }
  0xc8   :  { %v181_v26 = vsel %vm179_vm1, 1.0, %v510_v28 }
  0xc9   :  { %v183_v33 = vadd.f32 %v181_v26, %v161_v27 }
  0xca   :  { %v186_v61 = vpop.permute.xlu1 %185 }
  0xcb   :  { %vm190_vm8 = vcmp.eq.s32.totalorder %v597_v56, %v186_v61 }
  0xcc   :  { %vm200_vm14 = vmand %vm190_vm8, %vm198_vm9  ;;  %vm221_vm8 = vcmp.eq.s32.totalorder %v219_v29, 1 }
  0xcd   :  { %v202_v22 = vsel %vm200_vm14, 1.0, %v510_v28 }
  0xce   :  { %v189_v4 = vpop.permute.xlu1 %188  ;;  %v204_v30 = vadd.f32 %v202_v22, %v182_v24 }
  0xcf   :  { %vm191_vm2 = vcmp.eq.s32.totalorder %v597_v56, %v189_v4 }
  0xd2   :  { %v197_v13 = vpop.permute.xlu1 %196 }
  0xd3   :  { %vm199_vm0 = vcmp.eq.s32.totalorder %v197_v13, 1 }
  0xd4   :  { %vm201_vm4 = vmand %vm191_vm2, %vm199_vm0 }
  0xd5   :  { %v203_v31 = vsel %vm201_vm4, 1.0, %v510_v28 }
  0xd6   :  { %v205_v36 = vadd.f32 %v203_v31, %v183_v33 }
  0xd7   :  { %v216_v25 = vpop.permute.xlu1 %215 }
  0xd8   :  { %vm220_vm6 = vcmp.eq.s32.totalorder %v216_v25, 1 }
  0xd9   :  { %vm222_vm7 = vmand %vm212_vm3, %vm220_vm6 }
  0xda   :  { %v224_v32 = vsel %vm222_vm7, 1.0, %v510_v28 }
  0xdb   :  { %v211_v34 = vpop.permute.xlu1 %210  ;;  %v226_v35 = vadd.f32 %v224_v32, %v204_v30 }
  0xdc   :  { %vm213_vm9 = vcmp.eq.s32.totalorder %v597_v56, %v211_v34 }
  0xdd   :  { %vm223_vm13 = vmand %vm213_vm9, %vm221_vm8  ;;  %418 = vmatprep.mubr.f32.mxu0 %v226_v35 }
  0xde   :  { %v225_v37 = vsel %vm223_vm13, 1.0, %v510_v28 }
  0xdf   :  { %v227_v38 = vadd.f32 %v225_v37, %v205_v36 }
  0xe1   :  { %419 = vmatmul.mubr.f32.vlgmr.msra.gmra.mxu0 %v227_v38 }
  0xef   :  { %v338_v39 = vpop.xlane.xlu0 %337 }
  0xf0   :  { %v342_v41 = vmax.f32 %v338_v39, 1.0 }
  0xf2   :  { %451 = vrcp.f32 %v342_v41 }
  0xff   :  { %v452_v43 = vpop.eup %451 }
 0x10d   :  { %v335_v40 = vpop.xlane.xlu1 %334 }
 0x10e   :  { %v341_v42 = vmax.f32 %v335_v40, 1.0 }
 0x110   :  { %453 = vrcp.f32 %v341_v42 }
 0x11d   :  { %v454_v45 = vpop.eup %453 }
 0x1a1   :  { %v420_v44 = vpop.f32.mrf.mxu0 }
 0x1a2   :  { %v346_v47 = vmul.f32 %v452_v43, %v420_v44 }
 0x1a3   :  { %v312_v46 = vpop.f32.mrf.mxu0 }
 0x1a4   :  { %v345_v48 = vmul.f32 %v454_v45, %v312_v46  ;;  %348 = vst [vmem:[#allocation5 + $0x8] sm:$0xff] %v346_v47 }
 0x1a6   :  { %347 = vst [vmem:[#allocation5] sm:$0xff] %v345_v48 }
 0x1a7   :  { %486 = shalt.err (!%p483_p9)
}
 0x1a8   :  { %360 = dma.vmem_to_hbm [thread:$0]  %s355_s1, 256, %s669_s2, [#allocation4], %s500_s12, %s500_s12, %s501_s13  }
 0x1a9   :  { %497 = dma.done.wait [#allocation4], 256  }
 0x1aa   :  { %498 = vsyncadd [#allocation4], 4294967040 }
 0x1ab   :  { %364 = vsyncpa [#allocation3], 1 }
 0x1ac   :  { %365 = vsyncpa [#allocation4], 1 }

</bundles_post_ra>
